<compile_context>
chip_gen: v7x
topology: tpu7x:2x2x1
jax: 0.10.0
libtpu: 0.0.40
codegen_flags: <defaults>
</compile_context>

<pallas_src>
import functools

import jax
import jax.numpy as jnp
from jax import lax
from jax.experimental import pallas as pl
from jax.experimental.pallas import tpu as pltpu


def _adain_rows_kernel(x_ref, sb_ref, o_ref, *, eps: float, norm: bool):
    # x_ref:  (rows, HW)  one (n, c) spatial plane per row
    # sb_ref: (rows, 2)   per-row [affine scale, affine bias(+1 folded in)]
    x = x_ref[...].astype(jnp.float32)
    scale = sb_ref[:, 0:1]
    bias = sb_ref[:, 1:2]
    if norm:
        # InstanceNorm2d(affine=False): biased variance, eps inside rsqrt.
        mean = jnp.mean(x, axis=-1, keepdims=True)
        xc = x - mean
        var = jnp.mean(xc * xc, axis=-1, keepdims=True)
        a = scale * lax.rsqrt(var + eps)          # fold norm + affine scale
        out = xc * a + bias
    else:
        out = x * scale + bias
    o_ref[...] = out.astype(o_ref.dtype)


def _pick_row_tile(total_rows: int, hw: int, itemsize: int,
                   *, target_bytes: int = 3 << 20, min_tiles: int = 4) -> int:
    """Rows per tile: multiple of the dtype sublane granule, x-tile <= ~3 MiB,
    preferring >= `min_tiles` (and an even number of) grid steps."""
    granule = 16 if itemsize == 2 else 8

    def rup(v, m):
        return ((v + m - 1) // m) * m

    # Largest row count whose x tile stays under target_bytes (>= one granule).
    cap = max(granule, (target_bytes // max(1, hw * itemsize)) // granule * granule)

    rows = min(cap, rup(total_rows, granule))
    n = pl.cdiv(total_rows, rows)
    if n < min_tiles or n % 2:                    # too few tiles, or odd count
        n = max(min_tiles, n + (n % 2))
        rows = min(cap, max(granule, rup(pl.cdiv(total_rows, n), granule)))
    return rows


def adain_forward(x, w, ws, bs, wb, bb, *, eps=1e-5, norm=True):
    """AdaIN forward.

    x:  (N, C_out, H, W) feature map
    w:  (N, C_in) controller vector
    ws: (C_in, C_out), bs: (C_out,)   -> affine_scale (weight pre-transposed)
    wb: (C_in, C_out), bb: (C_out,)   -> affine_bias  (weight pre-transposed)
    """
    N, C, H, W = x.shape
    HW = H * W
    R = N * C
    itemsize = jnp.dtype(x.dtype).itemsize

    # ---- 1) tiny affine in plain XLA (no kernel launch overhead) -----------
    # y_scale = w @ ws + bs ; y_bias = 1 + w @ wb + bb   -> packed per row.
    wsb = jnp.concatenate([ws, wb], axis=1).astype(jnp.float32)     # (C_in, 2C)
    bsb = jnp.concatenate([bs, 1.0 + bb], axis=0).astype(jnp.float32)
    y = w.astype(jnp.float32) @ wsb + bsb                           # (N, 2C)
    # (R, 2): row r = n*C + c -> [scale(n,c), bias(n,c)]
    sb = jnp.stack([y[:, :C], y[:, C:]], axis=-1).reshape(R, 2)

    # ---- 2) row-tiled normalize + folded affine -----------------------------
    x2 = x.reshape(R, HW)
    rows = _pick_row_tile(R, HW, itemsize)
    grid = (pl.cdiv(R, rows),)                    # partial last tile is padded

    # Double-buffered x-in + out + sb per step, plus headroom; cap keeps any
    # tuned value safe on v7x (64 MiB physical VMEM per TensorCore).
    tile_io_bytes = rows * HW * itemsize * 2 + rows * 2 * 4
    vmem_limit = int(min(max(4 * tile_io_bytes, 4 << 20), 48 << 20))

    kernel = functools.partial(_adain_rows_kernel, eps=eps, norm=norm)

    out = pl.pallas_call(
        kernel,
        out_shape=jax.ShapeDtypeStruct((R, HW), x.dtype),
        grid=grid,
        in_specs=[
            pl.BlockSpec((rows, HW), lambda i: (i, 0)),
            pl.BlockSpec((rows, 2), lambda i: (i, 0)),
        ],
        out_specs=pl.BlockSpec((rows, HW), lambda i: (i, 0)),
        compiler_params=pltpu.CompilerParams(
            dimension_semantics=("parallel",),
            vmem_limit_bytes=vmem_limit),
        cost_estimate=pl.CostEstimate(
            flops=5 * R * HW,
            transcendentals=R,
            bytes_accessed=2 * R * HW * itemsize + R * 2 * 4),
    )(x2, sb)

    return out.reshape(N, C, H, W)


def adain_reference(x, w, ws, bs, wb, bb, *, eps=1e-5, norm=True):
    y_scale = (w @ ws + bs)[:, :, None, None]
    y_bias = 1.0 + (w @ wb + bb)[:, :, None, None]
    if norm:
        mean = jnp.mean(x, axis=(2, 3), keepdims=True)
        var = jnp.mean((x - mean) ** 2, axis=(2, 3), keepdims=True)
        x = (x - mean) * lax.rsqrt(var + eps)
    return x * y_scale + y_bias


def _make_inputs(key, N, C_in, C_out, H, W):
    k_x, k_w, k_ws, k_bs, k_wb, k_bb = jax.random.split(key, 6)
    x = jax.random.normal(k_x, (N, C_out, H, W), dtype=jnp.float32)
    w = jax.random.normal(k_w, (N, C_in), dtype=jnp.float32)
    bound = 1.0 / jnp.sqrt(jnp.float32(C_in))
    # Linear params stored as (C_in, C_out), i.e. already transposed.
    ws = jax.random.uniform(k_ws, (C_in, C_out), jnp.float32, -bound, bound)
    bs = jax.random.uniform(k_bs, (C_out,), jnp.float32, -bound, bound)
    wb = jax.random.uniform(k_wb, (C_in, C_out), jnp.float32, -bound, bound)
    bb = jax.random.uniform(k_bb, (C_out,), jnp.float32, -bound, bound)
    return x, w, ws, bs, wb, bb


if __name__ == "__main__":
    key = jax.random.PRNGKey(0)
    k1, k2 = jax.random.split(key)

    # Test 1: module config AdaIN(in_channels=32, out_channels=4, norm=True)
    # at small shapes (N*C = 8 rows -> single 8-row tile).
    x, w, ws, bs, wb, bb = _make_inputs(k1, N=2, C_in=32, C_out=4, H=16, W=16)
    out = jax.block_until_ready(adain_forward(x, w, ws, bs, wb, bb, norm=True))
    ref = adain_reference(x, w, ws, bs, wb, bb, norm=True)
    assert out.shape == (2, 4, 16, 16)
    assert jnp.allclose(out, ref, atol=1e-4, rtol=1e-4), "mismatch (norm=True)"

    # norm=False path of the same module config.
    out_nn = jax.block_until_ready(
        adain_forward(x, w, ws, bs, wb, bb, norm=False))
    ref_nn = adain_reference(x, w, ws, bs, wb, bb, norm=False)
    assert jnp.allclose(out_nn, ref_nn, atol=1e-4, rtol=1e-4), \
        "mismatch (norm=False)"

    # Test 2: larger shape exercising the multi-tile, pipelined, even-count
    # grid (N*C = 128 rows, HW = 4096 -> 32-row tiles, grid=(4,)).
    x2, w2, ws2, bs2, wb2, bb2 = _make_inputs(
        k2, N=2, C_in=32, C_out=64, H=64, W=64)
    out2 = jax.block_until_ready(
        adain_forward(x2, w2, ws2, bs2, wb2, bb2, norm=True))
    ref2 = adain_reference(x2, w2, ws2, bs2, wb2, bb2, norm=True)
    assert jnp.allclose(out2, ref2, atol=1e-4, rtol=1e-4), \
        "mismatch (tiled grid)"

    print("KERNEL_OK")
</pallas_src>

<mosaic_0001>
module attributes {stable_mosaic.version = 11 : i64} {
  func.func @_adain_rows_kernel(%arg0: i32, %arg1: memref<8x256xf32, #tpu.memory_space<vmem>>, %arg2: memref<8x2xf32, #tpu.memory_space<vmem>>, %arg3: memref<8x256xf32, #tpu.memory_space<vmem>>) attributes {dimension_semantics = [#tpu.dimension_semantics<parallel>], iteration_bounds = array<i64: 1>, scalar_prefetch = 0 : i64, scratch_operands = 0 : i64, tpu.core_type = #tpu.core_type<tc>, window_params = [{transform_indices = @transform_0, window_bounds = array<i64: 8, 256>}, {transform_indices = @transform_1, window_bounds = array<i64: 8, 2>}, {transform_indices = @transform_2, window_bounds = array<i64: 8, 256>}]} {
    %c0 = arith.constant 0 : index
    %c0_0 = arith.constant 0 : index
    %0 = vector.load %arg1[%c0, %c0_0] : memref<8x256xf32, #tpu.memory_space<vmem>>, vector<8x256xf32>
    %c0_1 = arith.constant 0 : index
    %c0_2 = arith.constant 0 : index
    %1 = vector.load %arg2[%c0_1, %c0_2] : memref<8x2xf32, #tpu.memory_space<vmem>>, vector<8x1xf32>
    %c0_3 = arith.constant 0 : index
    %c1 = arith.constant 1 : index
    %2 = vector.load %arg2[%c0_3, %c1] : memref<8x2xf32, #tpu.memory_space<vmem>>, vector<8x1xf32>
    %cst = arith.constant dense<0.000000e+00> : vector<8xf32>
    %3 = vector.multi_reduction <add>, %0, %cst [1] : vector<8x256xf32> to vector<8xf32>
    %4 = vector.shape_cast %3 : vector<8xf32> to vector<8x1xf32>
    %cst_4 = arith.constant 2.560000e+02 : f32
    %5 = vector.broadcast %cst_4 : f32 to vector<8x1xf32>
    %6 = arith.divf %4, %5 : vector<8x1xf32>
    %7 = vector.broadcast %6 : vector<8x1xf32> to vector<8x256xf32>
    %8 = arith.subf %0, %7 : vector<8x256xf32>
    %9 = arith.mulf %8, %8 : vector<8x256xf32>
    %cst_5 = arith.constant dense<0.000000e+00> : vector<8xf32>
    %10 = vector.multi_reduction <add>, %9, %cst_5 [1] : vector<8x256xf32> to vector<8xf32>
    %11 = vector.shape_cast %10 : vector<8xf32> to vector<8x1xf32>
    %cst_6 = arith.constant 2.560000e+02 : f32
    %12 = vector.broadcast %cst_6 : f32 to vector<8x1xf32>
    %13 = arith.divf %11, %12 : vector<8x1xf32>
    %cst_7 = arith.constant 9.99999974E-6 : f32
    %14 = vector.broadcast %cst_7 : f32 to vector<8x1xf32>
    %15 = arith.addf %13, %14 : vector<8x1xf32>
    %16 = math.rsqrt %15 : vector<8x1xf32>
    %17 = arith.mulf %1, %16 : vector<8x1xf32>
    %18 = vector.broadcast %17 : vector<8x1xf32> to vector<8x256xf32>
    %19 = arith.mulf %8, %18 : vector<8x256xf32>
    %20 = vector.broadcast %2 : vector<8x1xf32> to vector<8x256xf32>
    %21 = arith.addf %19, %20 : vector<8x256xf32>
    %c0_8 = arith.constant 0 : index
    %c0_9 = arith.constant 0 : index
    %22 = vector.load %arg3[%c0_8, %c0_9] : memref<8x256xf32, #tpu.memory_space<vmem>>, vector<8x256xf32>
    tpu.vector_store %arg3[%c0_8, %c0_9], %21 {strides = array<i32>} : memref<8x256xf32, #tpu.memory_space<vmem>>, vector<8x256xf32>,
    return
  }
  func.func @transform_0(%arg0: i32) -> (i32, i32) {
    %c0_i32 = arith.constant 0 : i32
    %c0_i32_0 = arith.constant 0 : i32
    return %arg0, %c0_i32 : i32, i32
  }
  func.func @transform_1(%arg0: i32) -> (i32, i32) {
    %c0_i32 = arith.constant 0 : i32
    %c0_i32_0 = arith.constant 0 : i32
    return %arg0, %c0_i32 : i32, i32
  }
  func.func @transform_2(%arg0: i32) -> (i32, i32) {
    %c0_i32 = arith.constant 0 : i32
    %c0_i32_0 = arith.constant 0 : i32
    return %arg0, %c0_i32 : i32, i32
  }
}

</mosaic_0001>

<bundles_post_ra>
// kernel: tpu_custom_call.1
= control target key start
LH: loop header
LB: loop body
LE: loop exit
PB: predicated region body
PF: predicated region fallthrough
CT: control target
= control target key end

     0   :  { %7 = vsyncpa [#allocation3], 0  ;;  %s177_s0 = inlined_call_operand.hbm [shape: f32[8,256], index: 0, kind: input, shape index: {}]   ;;  %s178_s1 = inlined_call_operand.vmem [shape: f32[8,2], index: 1, kind: input, shape index: {}]   ;;  %s179_s2 = inlined_call_operand.hbm [shape: f32[8,256], index: 2, kind: output, shape index: {}]  }
   0x1   :  { %8 = vsyncpa [#allocation4], 0  ;;  %s131_s9 = smov [#allocation2]   ;;  %s83_s13 = scalar_lea.hbm %s177_s0, 256 }
   0x2   :  { %s15_s10 = sshll.u32 %s131_s9, 4  ;;  %p84_p0 = scmp.ne.s32.totalorder %s177_s0, %s83_s13  ;;  %s16_s10 = int_to_ptr.vmem [resolvable:$true] %s15_s10 }
   0x3   :  { %p87_p1 = scmp.lt.u32.totalorder %s83_s13, %s177_s0 }
   0x5   :  { %p89_p2 = pnand %p87_p1, %p84_p0 }
   0x7   :  { %92 = shalt.err (!%p89_p2)
}
   0x8   :  { %s93_s18 = scalar_lea.vmem %s16_s10, 256  ;;  %p98_p4 = scmp.lt.s32.totalorder %s16_s10, %s16_s10 }
   0x9   :  { %p94_p3 = scmp.ne.s32.totalorder %s16_s10, %s93_s18  ;;  %p99_p5 = scmp.lt.s32.totalorder %s93_s18, %s93_s18 }
   0xb   :  { %p100_p6 = por %p99_p5, %p98_p4 }
   0xd   :  { %p101_p7 = pnand %p100_p6, %p94_p3 }
   0xf   :  { %104 = shalt.err (!%p101_p7)
}
  0x10   :  { %18 = dma.hbm_to_vmem [thread:$0]  %s177_s0, 256, %s16_s10, [#allocation3]  }
  0x11   :  { %127 = dma.done.wait [#allocation3], 256  }
  0x12   :  { %128 = vsyncadd [#allocation3], 4294967040  ;;  %v24_v0 = vld [vmem:[#allocation2] sm:$0xff]  ;;  %v25_v1 = vld [vmem:[#allocation2 + $0x8] sm:$0xff]  ;;  %v132_v10 = vmov 0   ;;  %v133_v11 = vmov 1  }
  0x13   :  { %v27_v2 = vadd.f32 %v25_v1, %v24_v0  ;;  %78 = vset.pattern.permute.xlu1 %v132_v10  ;;  %80 = vset.pattern.permute.xlu0 %v133_v11  ;;  %v26_v15 = vld [vmem:[%s178_s1] sm:$0xff]  ;;  %s134_s22 = smov [#allocation5]  }
  0x14   :  { %s65_s23 = sshll.u32 %s134_s22, 4  ;;  %s66_s23 = int_to_ptr.vmem [resolvable:$true] %s65_s23 }
  0x15   :  { %28 = vadd.xlane.f32.xlu0 %v27_v2  ;;  %s105_s24 = scalar_lea.vmem %s66_s23, 256  ;;  %p110_p9 = scmp.lt.s32.totalorder %s66_s23, %s66_s23 }
  0x16   :  { %p106_p8 = scmp.ne.s32.totalorder %s66_s23, %s105_s24  ;;  %p111_p10 = scmp.lt.s32.totalorder %s105_s24, %s105_s24 }
  0x18   :  { %p112_p11 = por %p111_p10, %p110_p9 }
  0x1a   :  { %p113_p12 = pnand %p112_p11, %p106_p8 }
  0xa2   :  { %v29_v3 = vpop.xlane.xlu0 %28 }
  0xa3   :  { %v31_v4 = vmul.f32 0.00390625, %v29_v3 }
  0xa5   :  { %v32_v5 = vsub.f32 %v24_v0, %v31_v4  ;;  %v33_v6 = vsub.f32 %v25_v1, %v31_v4 }
  0xa7   :  { %v34_v7 = vmul.f32 %v32_v5, %v32_v5  ;;  %v35_v8 = vmul.f32 %v33_v6, %v33_v6 }
  0xa9   :  { %v36_v9 = vadd.f32 %v35_v8, %v34_v7 }
  0xab   :  { %37 = vadd.xlane.f32.xlu0 %v36_v9 }
 0x138   :  { %v38_v12 = vpop.xlane.xlu0 %37 }
 0x139   :  { %v39_v13 = vmul.f32 0.00390625, %v38_v12 }
 0x13b   :  { %v40_v14 = vadd.f32 1e-05, %v39_v13 }
 0x13d   :  { %81 = vrsqrt.f32 %v40_v14 }
 0x147   :  { %v82_v16 = vpop.eup %81 }
 0x148   :  { %v42_v17 = vmul.f32 %v82_v16, %v26_v15 }
 0x14a   :  { %45 = vperm.xlu1 %78, %v42_v17  }
 0x14e   :  { %79 = vset.pattern.permute.xlu1 %v133_v11 }
 0x14f   :  { %52 = vperm.xlu1 %79, %v26_v15  }
 0x1c9   :  { %v46_v18 = vpop.permute.xlu1 %45 }
 0x1ca   :  { %v48_v19 = vmul.f32 %v46_v18, %v32_v5  ;;  %v49_v20 = vmul.f32 %v46_v18, %v33_v6 }
 0x1ce   :  { %v53_v21 = vpop.permute.xlu1 %52 }
 0x1cf   :  { %v55_v22 = vadd.f32 %v53_v21, %v48_v19  ;;  %v56_v23 = vadd.f32 %v53_v21, %v49_v20 }
 0x1d1   :  { %57 = vst [vmem:[#allocation5] sm:$0xff] %v55_v22  ;;  %58 = vst [vmem:[#allocation5 + $0x8] sm:$0xff] %v56_v23 }
 0x1d2   :  { %116 = shalt.err (!%p113_p12)
}
 0x1d3   :  { %s117_s26 = scalar_lea.hbm %s179_s2, 256 }
 0x1d4   :  { %p118_p13 = scmp.ne.s32.totalorder %s179_s2, %s117_s26  ;;  %p121_p0 = scmp.lt.u32.totalorder %s117_s26, %s179_s2 }
 0x1d6   :  { %p123_p1 = pnand %p121_p0, %p118_p13 }
 0x1d8   :  { %126 = shalt.err (!%p123_p1)
}
 0x1d9   :  { %68 = dma.vmem_to_hbm [thread:$0]  %s66_s23, 256, %s179_s2, [#allocation4]  }
 0x1da   :  { %129 = dma.done.wait [#allocation4], 256  }
 0x1db   :  { %130 = vsyncadd [#allocation4], 4294967040 }
 0x1dc   :  { %72 = vsyncpa [#allocation3], 1 }
 0x1dd   :  { %73 = vsyncpa [#allocation4], 1 }

</bundles_post_ra>
